<compile_context>
chip_gen: v7x
topology: tpu7x:2x2x1
jax: 0.10.0
libtpu: 0.0.40
codegen_flags: <defaults>
</compile_context>

<pallas_src>
import jax
import jax.numpy as jnp
from jax.experimental import pallas as pl
from jax.experimental.pallas import tpu as pltpu


def make_rnn_kernel(T, B):
    """Build the fused RNN kernel for static (T, B)."""

    def rnn_kernel(x_ref, wih_ref, whh_ref, b_ref, wfc_ref, bfc_ref, out_ref):
        # ---- Hoisted input projection: (T*B, E) @ (E, H) + b  -> (T*B, H) ----
        x_proj = (jnp.dot(x_ref[...], wih_ref[...],
                          preferred_element_type=jnp.float32)
                  + b_ref[...])

        w_hh = whh_ref[...]                       # (H, H), loaded once
        H = w_hh.shape[0]

        # ---- Serial recurrence, h carried in vregs (zero initial state) ----
        h = jnp.zeros((B, H), jnp.float32)
        hs = []
        for t in range(T):                        # T is small & static: unrolled
            xp_t = x_proj[t * B:(t + 1) * B, :]   # static slice, (B, H)
            h = jnp.tanh(xp_t + jnp.dot(h, w_hh,
                                        preferred_element_type=jnp.float32))
            hs.append(h)
        h_all = jnp.concatenate(hs, axis=0)       # (T*B, H), time-major

        # ---- Hoisted fc projection: one (T*B, H) @ (H, O_pad) + b_fc ----
        logits = (jnp.dot(h_all, wfc_ref[...],
                          preferred_element_type=jnp.float32)
                  + bfc_ref[...])                 # (T*B, O_pad)
        out_ref[...] = logits.astype(out_ref.dtype)   # single lane-dense store

    return rnn_kernel


def small_rnn_text_generator(tokens, emb_table, w_ih, w_hh, b_sum, w_fc, b_fc):
    """Pallas equivalent of SmallRNNTextGenerator.forward.

    tokens:    (B, T) int32
    emb_table: (V, E)
    w_ih:      (E, H)   (= torch weight_ih_l0.T)
    w_hh:      (H, H)   (= torch weight_hh_l0.T)
    b_sum:     (1, H)   (= bias_ih_l0 + bias_hh_l0)
    w_fc:      (H, O)   (= torch fc.weight.T)
    b_fc:      (1, O)
    returns    (B, T, O) float32
    """
    B, T = tokens.shape
    E = emb_table.shape[1]
    H = w_ih.shape[1]
    O = w_fc.shape[1]
    O_pad = ((O + 127) // 128) * 128              # lane-dense output width

    # Embedding lookup (gather) stays in plain JAX glue; flatten time-major.
    embedded = jnp.take(emb_table, tokens, axis=0)            # (B, T, E)
    x_tb = jnp.transpose(embedded, (1, 0, 2)).reshape(T * B, E)

    # Zero-pad fc weights/bias so the output slab's last dim is 128-wide.
    w_fc_pad = jnp.zeros((H, O_pad), jnp.float32).at[:, :O].set(w_fc)
    b_fc_pad = jnp.zeros((1, O_pad), jnp.float32).at[:, :O].set(b_fc)

    out_flat = pl.pallas_call(
        make_rnn_kernel(T, B),
        out_shape=jax.ShapeDtypeStruct((T * B, O_pad), jnp.float32),
        grid_spec=pltpu.PrefetchScalarGridSpec(
            num_scalar_prefetch=0,
            grid=(1,),                              # single step: loop is in-kernel
            in_specs=[
                pl.BlockSpec((T * B, E), lambda i: (0, 0)),   # embedded x, time-major
                pl.BlockSpec((E, H), lambda i: (0, 0)),       # W_ih
                pl.BlockSpec((H, H), lambda i: (0, 0)),       # W_hh
                pl.BlockSpec((1, H), lambda i: (0, 0)),       # b_ih + b_hh
                pl.BlockSpec((H, O_pad), lambda i: (0, 0)),   # W_fc (padded)
                pl.BlockSpec((1, O_pad), lambda i: (0, 0)),   # b_fc (padded)
            ],
            out_specs=pl.BlockSpec((T * B, O_pad), lambda i: (0, 0)),
            scratch_shapes=[],
        ),
        compiler_params=pltpu.CompilerParams(
            dimension_semantics=("arbitrary",),
        ),
    )(x_tb, w_ih, w_hh, b_sum, w_fc_pad, b_fc_pad)

    out = out_flat.reshape(T, B, O_pad)[:, :, :O]             # drop lane padding
    return jnp.transpose(out, (1, 0, 2))                      # (B, T, O) batch_first


def reference_forward(tokens, emb_table, w_ih, w_hh, b_sum, w_fc, b_fc):
    """Pure-JAX reference matching PyTorch nn.Embedding + nn.RNN + nn.Linear."""
    embedded = jnp.take(emb_table, tokens, axis=0)            # (B, T, E)
    B, T, E = embedded.shape
    H = w_ih.shape[1]

    def step(h, x_t):
        h_new = jnp.tanh(x_t @ w_ih + h @ w_hh + b_sum[0])
        return h_new, h_new

    x_tbe = jnp.transpose(embedded, (1, 0, 2))
    _, hs = jax.lax.scan(step, jnp.zeros((B, H), jnp.float32), x_tbe)
    out = hs @ w_fc + b_fc[0]                                 # (T, B, O)
    return jnp.transpose(out, (1, 0, 2))


if __name__ == "__main__":
    # Small shapes consistent with the module.
    vocab = 50          # input_dim
    emb_dim = 32
    hidden_dim = 32
    output_dim = 50
    B, T = 2, 8

    key = jax.random.PRNGKey(0)
    k_emb, k_wih, k_whh, k_bih, k_bhh, k_wfc, k_bfc, k_tok = jax.random.split(key, 8)

    # Deterministic parameter init (shapes from nn.Embedding / nn.RNN / nn.Linear).
    emb_table = jax.random.normal(k_emb, (vocab, emb_dim), jnp.float32)
    scale = 1.0 / jnp.sqrt(hidden_dim)
    w_ih = jax.random.uniform(k_wih, (emb_dim, hidden_dim), jnp.float32, -scale, scale)
    w_hh = jax.random.uniform(k_whh, (hidden_dim, hidden_dim), jnp.float32, -scale, scale)
    b_ih = jax.random.uniform(k_bih, (hidden_dim,), jnp.float32, -scale, scale)
    b_hh = jax.random.uniform(k_bhh, (hidden_dim,), jnp.float32, -scale, scale)
    w_fc = jax.random.uniform(k_wfc, (hidden_dim, output_dim), jnp.float32, -scale, scale)
    b_fc = jax.random.uniform(k_bfc, (output_dim,), jnp.float32, -scale, scale)

    b_sum = (b_ih + b_hh).reshape(1, hidden_dim)
    b_fc2 = b_fc.reshape(1, output_dim)

    tokens = jax.random.randint(k_tok, (B, T), 0, vocab, jnp.int32)

    out = small_rnn_text_generator(tokens, emb_table, w_ih, w_hh, b_sum, w_fc, b_fc2)
    out = jax.block_until_ready(out)

    ref = reference_forward(tokens, emb_table, w_ih, w_hh, b_sum, w_fc, b_fc2)
    assert out.shape == (B, T, output_dim)
    assert jnp.allclose(out, ref, atol=1e-3, rtol=1e-3)

    print("KERNEL_OK")
</pallas_src>

<mosaic_0001>
module attributes {stable_mosaic.version = 11 : i64} {
  func.func @rnn_kernel(%arg0: i32, %arg1: memref<16x32xf32, #tpu.memory_space<vmem>>, %arg2: memref<32x32xf32, #tpu.memory_space<vmem>>, %arg3: memref<32x32xf32, #tpu.memory_space<vmem>>, %arg4: memref<1x32xf32, #tpu.memory_space<vmem>>, %arg5: memref<32x128xf32, #tpu.memory_space<vmem>>, %arg6: memref<1x128xf32, #tpu.memory_space<vmem>>, %arg7: memref<16x128xf32, #tpu.memory_space<vmem>>) attributes {dimension_semantics = [#tpu.dimension_semantics<arbitrary>], iteration_bounds = array<i64: 1>, scalar_prefetch = 0 : i64, scratch_operands = 0 : i64, tpu.core_type = #tpu.core_type<tc>, window_params = [{pipeline_mode = #tpu.pipeline_mode<synchronous>, transform_indices = @transform_0, window_bounds = array<i64: 16, 32>}, {pipeline_mode = #tpu.pipeline_mode<synchronous>, transform_indices = @transform_1, window_bounds = array<i64: 32, 32>}, {pipeline_mode = #tpu.pipeline_mode<synchronous>, transform_indices = @transform_2, window_bounds = array<i64: 32, 32>}, {pipeline_mode = #tpu.pipeline_mode<synchronous>, transform_indices = @transform_3, window_bounds = array<i64: 1, 32>}, {pipeline_mode = #tpu.pipeline_mode<synchronous>, transform_indices = @transform_4, window_bounds = array<i64: 32, 128>}, {pipeline_mode = #tpu.pipeline_mode<synchronous>, transform_indices = @transform_5, window_bounds = array<i64: 1, 128>}, {pipeline_mode = #tpu.pipeline_mode<synchronous>, transform_indices = @transform_6, window_bounds = array<i64: 16, 128>}]} {
    %c0 = arith.constant 0 : index
    %c0_0 = arith.constant 0 : index
    %0 = vector.load %arg1[%c0, %c0_0] : memref<16x32xf32, #tpu.memory_space<vmem>>, vector<16x32xf32>
    %c0_1 = arith.constant 0 : index
    %c0_2 = arith.constant 0 : index
    %1 = vector.load %arg2[%c0_1, %c0_2] : memref<32x32xf32, #tpu.memory_space<vmem>>, vector<32x32xf32>
    %cst = arith.constant dense<0.000000e+00> : vector<16x32xf32>
    %2 = tpu.matmul %0, %1, %cst {dimension_numbers = #tpu.dot_dimension_numbers<[1], [0], [0], [1], [0, 0, 1, 1], [], []>} : vector<16x32xf32>, vector<32x32xf32>, vector<16x32xf32> -> vector<16x32xf32>
    %c0_3 = arith.constant 0 : index
    %c0_4 = arith.constant 0 : index
    %3 = vector.load %arg4[%c0_3, %c0_4] : memref<1x32xf32, #tpu.memory_space<vmem>>, vector<1x32xf32>
    %4 = vector.broadcast %3 : vector<1x32xf32> to vector<16x32xf32>
    %5 = arith.addf %2, %4 : vector<16x32xf32>
    %c0_5 = arith.constant 0 : index
    %c0_6 = arith.constant 0 : index
    %6 = vector.load %arg3[%c0_5, %c0_6] : memref<32x32xf32, #tpu.memory_space<vmem>>, vector<32x32xf32>
    %cst_7 = arith.constant 0.000000e+00 : f32
    %7 = vector.broadcast %cst_7 : f32 to vector<2x32xf32>
    %8 = vector.extract_strided_slice %5 {offsets = [0, 0], sizes = [2, 32], strides = [1, 1]} : vector<16x32xf32> to vector<2x32xf32>
    %cst_8 = arith.constant dense<0.000000e+00> : vector<2x32xf32>
    %9 = tpu.matmul %7, %6, %cst_8 {dimension_numbers = #tpu.dot_dimension_numbers<[1], [0], [0], [1], [0, 0, 1, 1], [], []>} : vector<2x32xf32>, vector<32x32xf32>, vector<2x32xf32> -> vector<2x32xf32>
    %10 = arith.addf %8, %9 : vector<2x32xf32>
    %11 = math.tanh %10 : vector<2x32xf32>
    %12 = vector.extract_strided_slice %5 {offsets = [2, 0], sizes = [2, 32], strides = [1, 1]} : vector<16x32xf32> to vector<2x32xf32>
    %cst_9 = arith.constant dense<0.000000e+00> : vector<2x32xf32>
    %13 = tpu.matmul %11, %6, %cst_9 {dimension_numbers = #tpu.dot_dimension_numbers<[1], [0], [0], [1], [0, 0, 1, 1], [], []>} : vector<2x32xf32>, vector<32x32xf32>, vector<2x32xf32> -> vector<2x32xf32>
    %14 = arith.addf %12, %13 : vector<2x32xf32>
    %15 = math.tanh %14 : vector<2x32xf32>
    %16 = vector.extract_strided_slice %5 {offsets = [4, 0], sizes = [2, 32], strides = [1, 1]} : vector<16x32xf32> to vector<2x32xf32>
    %cst_10 = arith.constant dense<0.000000e+00> : vector<2x32xf32>
    %17 = tpu.matmul %15, %6, %cst_10 {dimension_numbers = #tpu.dot_dimension_numbers<[1], [0], [0], [1], [0, 0, 1, 1], [], []>} : vector<2x32xf32>, vector<32x32xf32>, vector<2x32xf32> -> vector<2x32xf32>
    %18 = arith.addf %16, %17 : vector<2x32xf32>
    %19 = math.tanh %18 : vector<2x32xf32>
    %20 = vector.extract_strided_slice %5 {offsets = [6, 0], sizes = [2, 32], strides = [1, 1]} : vector<16x32xf32> to vector<2x32xf32>
    %cst_11 = arith.constant dense<0.000000e+00> : vector<2x32xf32>
    %21 = tpu.matmul %19, %6, %cst_11 {dimension_numbers = #tpu.dot_dimension_numbers<[1], [0], [0], [1], [0, 0, 1, 1], [], []>} : vector<2x32xf32>, vector<32x32xf32>, vector<2x32xf32> -> vector<2x32xf32>
    %22 = arith.addf %20, %21 : vector<2x32xf32>
    %23 = math.tanh %22 : vector<2x32xf32>
    %24 = vector.extract_strided_slice %5 {offsets = [8, 0], sizes = [2, 32], strides = [1, 1]} : vector<16x32xf32> to vector<2x32xf32>
    %cst_12 = arith.constant dense<0.000000e+00> : vector<2x32xf32>
    %25 = tpu.matmul %23, %6, %cst_12 {dimension_numbers = #tpu.dot_dimension_numbers<[1], [0], [0], [1], [0, 0, 1, 1], [], []>} : vector<2x32xf32>, vector<32x32xf32>, vector<2x32xf32> -> vector<2x32xf32>
    %26 = arith.addf %24, %25 : vector<2x32xf32>
    %27 = math.tanh %26 : vector<2x32xf32>
    %28 = vector.extract_strided_slice %5 {offsets = [10, 0], sizes = [2, 32], strides = [1, 1]} : vector<16x32xf32> to vector<2x32xf32>
    %cst_13 = arith.constant dense<0.000000e+00> : vector<2x32xf32>
    %29 = tpu.matmul %27, %6, %cst_13 {dimension_numbers = #tpu.dot_dimension_numbers<[1], [0], [0], [1], [0, 0, 1, 1], [], []>} : vector<2x32xf32>, vector<32x32xf32>, vector<2x32xf32> -> vector<2x32xf32>
    %30 = arith.addf %28, %29 : vector<2x32xf32>
    %31 = math.tanh %30 : vector<2x32xf32>
    %32 = vector.extract_strided_slice %5 {offsets = [12, 0], sizes = [2, 32], strides = [1, 1]} : vector<16x32xf32> to vector<2x32xf32>
    %cst_14 = arith.constant dense<0.000000e+00> : vector<2x32xf32>
    %33 = tpu.matmul %31, %6, %cst_14 {dimension_numbers = #tpu.dot_dimension_numbers<[1], [0], [0], [1], [0, 0, 1, 1], [], []>} : vector<2x32xf32>, vector<32x32xf32>, vector<2x32xf32> -> vector<2x32xf32>
    %34 = arith.addf %32, %33 : vector<2x32xf32>
    %35 = math.tanh %34 : vector<2x32xf32>
    %36 = vector.extract_strided_slice %5 {offsets = [14, 0], sizes = [2, 32], strides = [1, 1]} : vector<16x32xf32> to vector<2x32xf32>
    %cst_15 = arith.constant dense<0.000000e+00> : vector<2x32xf32>
    %37 = tpu.matmul %35, %6, %cst_15 {dimension_numbers = #tpu.dot_dimension_numbers<[1], [0], [0], [1], [0, 0, 1, 1], [], []>} : vector<2x32xf32>, vector<32x32xf32>, vector<2x32xf32> -> vector<2x32xf32>
    %38 = arith.addf %36, %37 : vector<2x32xf32>
    %39 = math.tanh %38 : vector<2x32xf32>
    %40 = tpu.concatenate %11, %15, %19, %23, %27, %31, %35, %39 in 0 : vector<2x32xf32>, vector<2x32xf32>, vector<2x32xf32>, vector<2x32xf32>, vector<2x32xf32>, vector<2x32xf32>, vector<2x32xf32>, vector<2x32xf32> -> vector<16x32xf32>
    %c0_16 = arith.constant 0 : index
    %c0_17 = arith.constant 0 : index
    %41 = vector.load %arg5[%c0_16, %c0_17] : memref<32x128xf32, #tpu.memory_space<vmem>>, vector<32x128xf32>
    %cst_18 = arith.constant dense<0.000000e+00> : vector<16x128xf32>
    %42 = tpu.matmul %40, %41, %cst_18 {dimension_numbers = #tpu.dot_dimension_numbers<[1], [0], [0], [1], [0, 0, 1, 1], [], []>} : vector<16x32xf32>, vector<32x128xf32>, vector<16x128xf32> -> vector<16x128xf32>
    %c0_19 = arith.constant 0 : index
    %c0_20 = arith.constant 0 : index
    %43 = vector.load %arg6[%c0_19, %c0_20] : memref<1x128xf32, #tpu.memory_space<vmem>>, vector<1x128xf32>
    %44 = vector.broadcast %43 : vector<1x128xf32> to vector<16x128xf32>
    %45 = arith.addf %42, %44 : vector<16x128xf32>
    %c0_21 = arith.constant 0 : index
    %c0_22 = arith.constant 0 : index
    %46 = vector.load %arg7[%c0_21, %c0_22] : memref<16x128xf32, #tpu.memory_space<vmem>>, vector<16x128xf32>
    tpu.vector_store %arg7[%c0_21, %c0_22], %45 {strides = array<i32>} : memref<16x128xf32, #tpu.memory_space<vmem>>, vector<16x128xf32>,
    return
  }
  func.func @transform_0(%arg0: i32) -> (i32, i32) {
    %c0_i32 = arith.constant 0 : i32
    %c0_i32_0 = arith.constant 0 : i32
    %c0_i32_1 = arith.constant 0 : i32
    return %c0_i32, %c0_i32_0 : i32, i32
  }
  func.func @transform_1(%arg0: i32) -> (i32, i32) {
    %c0_i32 = arith.constant 0 : i32
    %c0_i32_0 = arith.constant 0 : i32
    %c0_i32_1 = arith.constant 0 : i32
    return %c0_i32, %c0_i32_0 : i32, i32
  }
  func.func @transform_2(%arg0: i32) -> (i32, i32) {
    %c0_i32 = arith.constant 0 : i32
    %c0_i32_0 = arith.constant 0 : i32
    %c0_i32_1 = arith.constant 0 : i32
    return %c0_i32, %c0_i32_0 : i32, i32
  }
  func.func @transform_3(%arg0: i32) -> (i32, i32) {
    %c0_i32 = arith.constant 0 : i32
    %c0_i32_0 = arith.constant 0 : i32
    %c0_i32_1 = arith.constant 0 : i32
    return %c0_i32, %c0_i32_0 : i32, i32
  }
  func.func @transform_4(%arg0: i32) -> (i32, i32) {
    %c0_i32 = arith.constant 0 : i32
    %c0_i32_0 = arith.constant 0 : i32
    %c0_i32_1 = arith.constant 0 : i32
    return %c0_i32, %c0_i32_0 : i32, i32
  }
  func.func @transform_5(%arg0: i32) -> (i32, i32) {
    %c0_i32 = arith.constant 0 : i32
    %c0_i32_0 = arith.constant 0 : i32
    %c0_i32_1 = arith.constant 0 : i32
    return %c0_i32, %c0_i32_0 : i32, i32
  }
  func.func @transform_6(%arg0: i32) -> (i32, i32) {
    %c0_i32 = arith.constant 0 : i32
    %c0_i32_0 = arith.constant 0 : i32
    %c0_i32_1 = arith.constant 0 : i32
    return %c0_i32, %c0_i32_0 : i32, i32
  }
}

</mosaic_0001>

<bundles_post_ra>
// kernel: tpu_custom_call.1
= control target key start
LH: loop header
LB: loop body
LE: loop exit
PB: predicated region body
PF: predicated region fallthrough
CT: control target
= control target key end

     0   :  { %11 = vsyncpa [#allocation3], 0  ;;  %s1522_s0 = inlined_call_operand.hbm [shape: f32[16,32], index: 0, kind: input, shape index: {}]   ;;  %s1523_s1 = inlined_call_operand.hbm [shape: f32[32,32], index: 1, kind: input, shape index: {}]   ;;  %s1524_s2 = inlined_call_operand.hbm [shape: f32[32,32], index: 2, kind: input, shape index: {}]   ;;  %s1525_s3 = inlined_call_operand.vmem [shape: f32[1,32], index: 3, kind: input, shape index: {}]   ;;  %s1526_s4 = inlined_call_operand.hbm [shape: f32[32,128], index: 4, kind: input, shape index: {}]   ;;  %s1527_s5 = inlined_call_operand.vmem [shape: f32[1,128], index: 5, kind: input, shape index: {}]   ;;  %s1528_s6 = inlined_call_operand.hbm [shape: f32[16,128], index: 6, kind: output, shape index: {}]  }
   0x1   :  { %12 = vsyncpa [#allocation6], 0 }
   0x2   :  { %13 = vsyncpa [#allocation9], 0 }
   0x3   :  { %14 = vsyncpa [#allocation4], 0  ;;  %s1306_s21 = smov [#allocation5]   ;;  %s1307_s23 = smov [#allocation2]  }
   0x4   :  { %s32_s22 = sshll.u32 %s1306_s21, 4  ;;  %s20_s24 = sshll.u32 %s1307_s23, 4  ;;  %s33_s22 = int_to_ptr.vmem [resolvable:$true] %s32_s22  ;;  %s1351_s24 = int_to_ptr.vmem [resolvable:$true] %s20_s24 }
   0x5   :  { %s1188_s27 = scalar_lea.hbm %s1523_s1, 512 }
   0x6   :  { %p1189_p0 = scmp.ne.s32.totalorder %s1523_s1, %s1188_s27  ;;  %p1192_p1 = scmp.lt.u32.totalorder %s1188_s27, %s1523_s1 }
   0x8   :  { %p1194_p2 = pnand %p1192_p1, %p1189_p0 }
   0xa   :  { %1197 = shalt.err (!%p1194_p2)
}
   0xb   :  { %s1198_s8 = scalar_lea.vmem %s33_s22, 512  ;;  %p1203_p4 = scmp.lt.s32.totalorder %s33_s22, %s33_s22 }
   0xc   :  { %p1199_p3 = scmp.ne.s32.totalorder %s33_s22, %s1198_s8  ;;  %p1204_p5 = scmp.lt.s32.totalorder %s1198_s8, %s1198_s8 }
   0xe   :  { %p1205_p6 = por %p1204_p5, %p1203_p4 }
  0x10   :  { %p1206_p7 = pnand %p1205_p6, %p1199_p3 }
  0x12   :  { %1209 = shalt.err (!%p1206_p7)
}
  0x13   :  { %s1308_s9 = smov 128   ;;  %s1309_s10 = smov 8  }
  0x14   :  { %38 = dma.hbm_to_vmem [thread:$0]  %s1523_s1, 512, %s33_s22, [#allocation6], %s1308_s9, %s1308_s9, %s1309_s10  }
  0x15   :  { %s1210_s15 = scalar_lea.hbm %s1522_s0, 256 }
  0x16   :  { %p1211_p8 = scmp.ne.s32.totalorder %s1522_s0, %s1210_s15  ;;  %p1214_p9 = scmp.lt.u32.totalorder %s1210_s15, %s1522_s0 }
  0x18   :  { %p1216_p10 = pnand %p1214_p9, %p1211_p8 }
  0x1a   :  { %1219 = shalt.err (!%p1216_p10)
}
  0x1b   :  { %s1220_s20 = scalar_lea.vmem %s1351_s24, 256  ;;  %p1225_p12 = scmp.lt.s32.totalorder %s1351_s24, %s1351_s24 }
  0x1c   :  { %p1221_p11 = scmp.ne.s32.totalorder %s1351_s24, %s1220_s20  ;;  %p1226_p13 = scmp.lt.s32.totalorder %s1220_s20, %s1220_s20 }
  0x1e   :  { %p1227_p0 = por %p1226_p13, %p1225_p12 }
  0x20   :  { %p1228_p1 = pnand %p1227_p0, %p1221_p11 }
  0x22   :  { %1231 = shalt.err (!%p1228_p1)
}
  0x23   :  { %26 = dma.hbm_to_vmem [thread:$0]  %s1522_s0, 256, %s1351_s24, [#allocation3], %s1308_s9, %s1308_s9, %s1309_s10  }
  0x24   :  { %s1310_s22 = smov [#allocation7]   ;;  %s1311_s25 = smov [#allocation8]  }
  0x25   :  { %s44_s23 = sshll.u32 %s1310_s22, 4  ;;  %s58_s26 = sshll.u32 %s1311_s25, 4  ;;  %s45_s23 = int_to_ptr.vmem [resolvable:$true] %s44_s23  ;;  %s1388_s26 = int_to_ptr.vmem [resolvable:$true] %s58_s26 }
  0x26   :  { %s1232_s29 = scalar_lea.hbm %s1524_s2, 512 }
  0x27   :  { %p1233_p2 = scmp.ne.s32.totalorder %s1524_s2, %s1232_s29  ;;  %p1236_p3 = scmp.lt.u32.totalorder %s1232_s29, %s1524_s2 }
  0x29   :  { %p1238_p4 = pnand %p1236_p3, %p1233_p2 }
  0x2b   :  { %1241 = shalt.err (!%p1238_p4)
}
  0x2c   :  { %s1242_s0 = scalar_lea.vmem %s45_s23, 512  ;;  %p1247_p6 = scmp.lt.s32.totalorder %s45_s23, %s45_s23 }
  0x2d   :  { %p1243_p5 = scmp.ne.s32.totalorder %s45_s23, %s1242_s0  ;;  %p1248_p7 = scmp.lt.s32.totalorder %s1242_s0, %s1242_s0 }
  0x2f   :  { %p1249_p8 = por %p1248_p7, %p1247_p6 }
  0x31   :  { %p1250_p9 = pnand %p1249_p8, %p1243_p5 }
  0x33   :  { %1253 = shalt.err (!%p1250_p9)
}
  0x34   :  { %50 = dma.hbm_to_vmem [thread:$0]  %s1524_s2, 512, %s45_s23, [#allocation6], %s1308_s9, %s1308_s9, %s1309_s10  }
  0x35   :  { %s1254_s15 = scalar_lea.hbm %s1526_s4, 512 }
  0x36   :  { %p1255_p10 = scmp.ne.s32.totalorder %s1526_s4, %s1254_s15  ;;  %p1258_p11 = scmp.lt.u32.totalorder %s1254_s15, %s1526_s4 }
  0x38   :  { %p1260_p12 = pnand %p1258_p11, %p1255_p10 }
  0x3a   :  { %1263 = shalt.err (!%p1260_p12)
}
  0x3b   :  { %s1264_s20 = scalar_lea.vmem %s1388_s26, 512  ;;  %p1269_p0 = scmp.lt.s32.totalorder %s1388_s26, %s1388_s26 }
  0x3c   :  { %p1265_p13 = scmp.ne.s32.totalorder %s1388_s26, %s1264_s20  ;;  %p1270_p1 = scmp.lt.s32.totalorder %s1264_s20, %s1264_s20 }
  0x3e   :  { %p1271_p2 = por %p1270_p1, %p1269_p0 }
  0x40   :  { %p1272_p3 = pnand %p1271_p2, %p1265_p13 }
  0x42   :  { %1275 = shalt.err (!%p1272_p3)
}
  0x43   :  { %64 = dma.hbm_to_vmem [thread:$0]  %s1526_s4, 512, %s1388_s26, [#allocation9], %s1308_s9, %s1308_s9, %s1309_s10  }
  0x44   :  { %1298 = dma.done.wait [#allocation3], 256  }
  0x45   :  { %1299 = vsyncadd [#allocation3], 4294967040 }
  0x46   :  { %1300 = dma.done.wait [#allocation6], 1024  }
  0x47   :  { %1301 = vsyncadd [#allocation6], 4294966272 }
  0x48   :  { %1302 = dma.done.wait [#allocation9], 512  }
  0x49   :  { %1303 = vsyncadd [#allocation9], 4294966784  ;;  %v1312_v0 = vmov 0.0|0.0   ;;  %vm1313_vm0 = vmmov 0   ;;  %v1314_v1 = vmov 0.0   ;;  %v81_v2 = vld [vmem:[#allocation5] sm:$0xff] }
  0x4a   :  { %1106 = vmatprep.subr.bf16.mxu1 %v1312_v0  ;;  %1007 = vmatprep.mubr.msk.f32.mxu1 %vm1313_vm0, %v1314_v1  ;;  %v82_v3 = vld [vmem:[#allocation5 + $0x8] sm:$0xff]  ;;  %v174_v4 = vld [vmem:[#allocation7] sm:$0xff]  ;;  %vm92_vm1 = vcmask 261120   ;;  %v83_v7 = vld [vmem:[#allocation5 + $0x10] sm:$0xff]  ;;  %vm801_vm2 = vcmask 1041408   ;;  %vm803_vm3 = vcmask 1043456  }
  0x4b   :  { %v1098_v5 = vpack.c.bf16 %v82_v3, %v81_v2  ;;  %v175_v6 = vld [vmem:[#allocation7 + $0x8] sm:$0xff]  ;;  %v84_v8 = vld [vmem:[#allocation5 + $0x18] sm:$0xff]  ;;  %v79_v11 = vld [vmem:[#allocation2] sm:$0xff]  ;;  %vm805_vm4 = vcmask 1045504   ;;  %s1315_s23 = smov [#allocation10]  }
  0x4c   :  { %v1428_v9 = vpack.c.bf16 %v175_v6, %v174_v4  ;;  %v1102_v10 = vpack.c.bf16 %v84_v8, %v83_v7  ;;  %v176_v12 = vld [vmem:[#allocation7 + $0x10] sm:$0xff]  ;;  %v177_v13 = vld [vmem:[#allocation7 + $0x18] sm:$0xff]  ;;  %996 = vmatprep.mubr.msk.f32.mxu0 %vm92_vm1, %v79_v11  ;;  %s909_s25 = sshll.u32 %s1315_s23, 4  ;;  %s910_s25 = int_to_ptr.vmem [resolvable:$true] %s909_s25 }
  0x4d   :  { %1099 = vmatprep.subr.bf16.mxu0 %v1098_v5  ;;  %v1432_v14 = vpack.c.bf16 %v177_v13, %v176_v12  ;;  %v80_v15 = vld [vmem:[#allocation2 + $0x8] sm:$0xff]  ;;  %v923_v16 = vld [vmem:[%s1525_s3] ss:$0 sm:$0xff]  ;;  %s1276_s26 = scalar_lea.vmem %s910_s25, 256  ;;  %p1281_p5 = scmp.lt.s32.totalorder %s910_s25, %s910_s25 }
  0x4e   :  { %1101 = vmatpush3.bf16.msra.mxu0 %v1098_v5  ;;  %1108 = vmatpush3.bf16.msra.mxu1 %v1428_v9  ;;  %v812_v2 = vld [vmem:[#allocation8 + $0x10] sm:$0xff]  ;;  %v813_v4 = vld [vmem:[#allocation8 + $0x18] sm:$0xff]  ;;  %p1277_p4 = scmp.ne.s32.totalorder %s910_s25, %s1276_s26  ;;  %p1282_p6 = scmp.lt.s32.totalorder %s1276_s26, %s1276_s26 }
  0x4f   :  { %1103 = vmatprep.subr.bf16.mxu0 %v1102_v10  ;;  %1109 = vmatprep.subr.bf16.mxu1 %v1312_v0  ;;  %v1158_v5 = vpack.c.bf16 %v813_v4, %v812_v2  ;;  %v933_v12 = vld [vmem:[%s1527_s5] ss:$0 sm:$0xff] }
  0x50   :  { %p1283_p7 = por %p1282_p6, %p1281_p5 }
  0x52   :  { %1105 = vmatpush3.bf16.msra.mxu0 %v1102_v10  ;;  %1111 = vmatpush3.bf16.msra.mxu1 %v1432_v14  ;;  %p1284_p8 = pnand %p1283_p7, %p1277_p4 }
  0x53   :  { %1112 = vmatprep.subr.bf16.mxu0 %v1312_v0  ;;  %1118 = vmatprep.subr.bf16.mxu1 %v1312_v0 }
  0x55   :  { %997 = vmatmul.mubr.msk.f32.vlgmr.msra.gmra.mrb[0].mxu0 %vm92_vm1, %v80_v15  ;;  %1008 = vmatmul.mubr.f32.vlgmr.msra.gmra.mrb[0].mxu1 %v1314_v1 }
  0x56   :  { %1114 = vmatpush3.bf16.msra.mxu0 %v1428_v9  ;;  %1018 = vmatprep.mubr.msk.f32.mxu0 %vm1313_vm0, %v1314_v1 }
  0x57   :  { %1115 = vmatprep.subr.bf16.mxu0 %v1312_v0  ;;  %1120 = vmatpush3.bf16.msra.mxu1 %v1428_v9 }
  0x58   :  { %1121 = vmatprep.subr.bf16.mxu1 %v1312_v0  ;;  %1029 = vmatprep.mubr.msk.f32.mxu1 %vm1313_vm0, %v1314_v1 }
  0x5a   :  { %1117 = vmatpush3.bf16.msra.mxu0 %v1432_v14 }
  0x5b   :  { %1123 = vmatpush3.bf16.msra.mxu1 %v1432_v14  ;;  %1124 = vmatprep.subr.bf16.mxu0 %v1312_v0 }
  0x5c   :  { %1130 = vmatprep.subr.bf16.mxu1 %v1312_v0 }
 0x128   :  { %v998_v17 = vpop.f32.mrb[0].mxu0  ;;  %v247_v18 = vpop.f32.mrb[0].mxu1 }
 0x129   :  { %v1455_v19 = vadd.f32 %v998_v17, %v923_v16  ;;  %v165_v20 = vpop.f32.mrb[1].mxu0  ;;  %v1009_v21 = vpop.f32.mrb[1].mxu1 }
 0x12a   :  { %v166_v22 = vadd.f32 %v923_v16, %v165_v20 }
 0x12c   :  { %v251_v23 = vadd.f32 %v247_v18, %v166_v22 }
 0x12e   :  { %1172 = vtanh.f32 %v251_v23 }
 0x138   :  { %v1173_v24 = vpop.eup %1172 }
 0x139   :  { %1019 = vmatmul.mubr.msk.f32.vlgmr.msra.gmra.mrb[2].mxu0 %vm92_vm1, %v1173_v24 }
 0x13a   :  { %1126 = vmatpush3.bf16.msra.mxu0 %v1428_v9  ;;  %1040 = vmatprep.mubr.msk.f32.mxu0 %vm1313_vm0, %v1314_v1 }
 0x13b   :  { %1127 = vmatprep.subr.bf16.mxu0 %v1312_v0 }
 0x13e   :  { %1129 = vmatpush3.bf16.msra.mxu0 %v1432_v14 }
 0x13f   :  { %1136 = vmatprep.subr.bf16.mxu0 %v1312_v0 }
 0x20c   :  { %v322_v25 = vpop.f32.mrb[2].mxu0 }
 0x20d   :  { %v327_v26 = vrot.slane %v322_v25, 6  ;;  %v1020_v27 = vpop.f32.mrb[3].mxu0 }
 0x20f   :  { %v329_v28 = vadd.f32 %v327_v26, %v166_v22 }
 0x211   :  { %1174 = vtanh.f32 %v329_v28 }
 0x21b   :  { %v1175_v29 = vpop.eup %1174 }
 0x21c   :  { %v332_v30 = vrot.slane %v1175_v29, 2  ;;  %v802_v36 = vsel %vm801_vm2, %v1173_v24, %v1175_v29 }
 0x21e   :  { %1030 = vmatmul.mubr.msk.f32.vlgmr.msra.gmra.mrb[2].mxu1 %vm92_vm1, %v332_v30 }
 0x21f   :  { %1132 = vmatpush3.bf16.msra.mxu1 %v1428_v9  ;;  %1051 = vmatprep.mubr.msk.f32.mxu1 %vm1313_vm0, %v1314_v1 }
 0x220   :  { %1133 = vmatprep.subr.bf16.mxu1 %v1312_v0 }
 0x223   :  { %1135 = vmatpush3.bf16.msra.mxu1 %v1432_v14 }
 0x224   :  { %1142 = vmatprep.subr.bf16.mxu1 %v1312_v0 }
 0x2f1   :  { %v401_v31 = vpop.f32.mrb[2].mxu1 }
 0x2f2   :  { %v406_v32 = vrot.slane %v401_v31, 4  ;;  %v1031_v33 = vpop.f32.mrb[3].mxu1 }
 0x2f4   :  { %v408_v34 = vadd.f32 %v406_v32, %v166_v22 }
 0x2f6   :  { %1176 = vtanh.f32 %v408_v34 }
 0x300   :  { %v1177_v35 = vpop.eup %1176 }
 0x301   :  { %v411_v37 = vrot.slane %v1177_v35, 4  ;;  %v804_v38 = vsel %vm803_vm3, %v802_v36, %v1177_v35 }
 0x303   :  { %1041 = vmatmul.mubr.msk.f32.vlgmr.msra.gmra.mrb[4].mxu0 %vm92_vm1, %v411_v37 }
 0x304   :  { %1138 = vmatpush3.bf16.msra.mxu0 %v1428_v9  ;;  %1062 = vmatprep.mubr.msk.f32.mxu0 %vm1313_vm0, %v1314_v1 }
 0x305   :  { %1139 = vmatprep.subr.bf16.mxu0 %v1312_v0 }
 0x308   :  { %1141 = vmatpush3.bf16.msra.mxu0 %v1432_v14 }
 0x309   :  { %1148 = vmatprep.subr.bf16.mxu0 %v1312_v0 }
 0x3d6   :  { %v480_v39 = vpop.f32.mrb[4].mxu0 }
 0x3d7   :  { %v485_v40 = vrot.slane %v480_v39, 2  ;;  %v1042_v41 = vpop.f32.mrb[5].mxu0 }
 0x3d9   :  { %v487_v42 = vadd.f32 %v485_v40, %v166_v22 }
 0x3db   :  { %1178 = vtanh.f32 %v487_v42 }
 0x3e5   :  { %v1179_v43 = vpop.eup %1178 }
 0x3e6   :  { %v490_v44 = vrot.slane %v1179_v43, 6  ;;  %v806_v45 = vsel %vm805_vm4, %v804_v38, %v1179_v43 }
 0x3e8   :  { %1052 = vmatmul.mubr.msk.f32.vlgmr.msra.gmra.mrb[4].mxu1 %vm92_vm1, %v490_v44 }
 0x3e9   :  { %1144 = vmatpush3.bf16.msra.mxu1 %v1428_v9  ;;  %1073 = vmatprep.mubr.msk.f32.mxu1 %vm1313_vm0, %v1314_v1 }
 0x3ea   :  { %1145 = vmatprep.subr.bf16.mxu1 %v1312_v0 }
 0x3ed   :  { %1147 = vmatpush3.bf16.msra.mxu1 %v1432_v14 }
 0x4bb   :  { %v559_v46 = vpop.f32.mrb[4].mxu1 }
 0x4bc   :  { %v563_v47 = vadd.f32 %v559_v46, %v1455_v19  ;;  %v1053_v48 = vpop.f32.mrb[5].mxu1 }
 0x4be   :  { %1180 = vtanh.f32 %v563_v47 }
 0x4c8   :  { %v1181_v49 = vpop.eup %1180 }
 0x4c9   :  { %1063 = vmatmul.mubr.msk.f32.vlgmr.msra.gmra.mrb[6].mxu0 %vm92_vm1, %v1181_v49 }
 0x4ca   :  { %1150 = vmatpush3.bf16.msra.mxu0 %v1428_v9  ;;  %1084 = vmatprep.mubr.msk.f32.mxu0 %vm1313_vm0, %v1314_v1  ;;  %v811_v1 = vld [vmem:[#allocation8 + $0x8] sm:$0xff] }
 0x4cb   :  { %1151 = vmatprep.subr.bf16.mxu0 %v1312_v0  ;;  %v810_v0 = vld [vmem:[#allocation8] sm:$0xff] }
 0x4cc   :  { %v1154_v3 = vpack.c.bf16 %v811_v1, %v810_v0 }
 0x4ce   :  { %1153 = vmatpush3.bf16.msra.mxu0 %v1432_v14  ;;  %1155 = vmatprep.subr.bf16.mxu1 %v1154_v3 }
 0x59c   :  { %v634_v50 = vpop.f32.mrb[6].mxu0 }
 0x59d   :  { %v639_v51 = vrot.slane %v634_v50, 6  ;;  %v1064_v52 = vpop.f32.mrb[7].mxu0 }
 0x59f   :  { %v641_v53 = vadd.f32 %v639_v51, %v1455_v19 }
 0x5a1   :  { %1182 = vtanh.f32 %v641_v53 }
 0x5ab   :  { %v1183_v54 = vpop.eup %1182 }
 0x5ac   :  { %v644_v55 = vrot.slane %v1183_v54, 2  ;;  %v807_v61 = vsel %vm801_vm2, %v1181_v49, %v1183_v54 }
 0x5ae   :  { %1074 = vmatmul.mubr.msk.f32.vlgmr.msra.gmra.mrb[6].mxu1 %vm92_vm1, %v644_v55 }
 0x5af   :  { %1095 = vmatprep.mubr.msk.f32.mxu1 %vm92_vm1, %v806_v45  ;;  %1157 = vmatpush3.bf16.msra.mxu1 %v1154_v3 }
 0x5b0   :  { %1159 = vmatprep.subr.bf16.mxu1 %v1158_v5 }
 0x5b3   :  { %1161 = vmatpush3.bf16.msra.mxu1 %v1158_v5 }
 0x681   :  { %v713_v56 = vpop.f32.mrb[6].mxu1 }
 0x682   :  { %v718_v57 = vrot.slane %v713_v56, 4  ;;  %v1075_v58 = vpop.f32.mrb[7].mxu1 }
 0x684   :  { %v720_v59 = vadd.f32 %v718_v57, %v1455_v19 }
 0x686   :  { %1184 = vtanh.f32 %v720_v59 }
 0x690   :  { %v1185_v60 = vpop.eup %1184 }
 0x691   :  { %v723_v62 = vrot.slane %v1185_v60, 4  ;;  %v808_v63 = vsel %vm803_vm3, %v807_v61, %v1185_v60 }
 0x693   :  { %1085 = vmatmul.mubr.msk.f32.vlgmr.msra.gmra.mrb[8].mxu0 %vm92_vm1, %v723_v62 }
 0x766   :  { %v792_v6 = vpop.f32.mrb[8].mxu0 }
 0x767   :  { %v797_v7 = vrot.slane %v792_v6, 2  ;;  %v1086_v8 = vpop.f32.mrb[9].mxu0 }
 0x769   :  { %v799_v9 = vadd.f32 %v797_v7, %v1455_v19 }
 0x76b   :  { %1186 = vtanh.f32 %v799_v9 }
 0x775   :  { %v1187_v10 = vpop.eup %1186 }
 0x776   :  { %v809_v11 = vsel %vm805_vm4, %v808_v63, %v1187_v10 }
 0x777   :  { %1096 = vmatmul.mubr.msk.f32.vlgmr.msra.gmra.mrb[8].mxu1 %vm92_vm1, %v809_v11 }
 0x84a   :  { %v1097_v13 = vpop.f32.mrb[8].mxu1 }
 0x84b   :  { %v899_v14 = vadd.f32 %v1097_v13, %v933_v12  ;;  %v893_v15 = vpop.f32.mrb[9].mxu1 }
 0x84c   :  { %v894_v16 = vadd.f32 %v933_v12, %v893_v15 }
 0x84d   :  { %903 = vst [vmem:[#allocation10 + $0x8] sm:$0xff] %v899_v14 }
 0x84e   :  { %902 = vst [vmem:[#allocation10] sm:$0xff] %v894_v16 }
 0x84f   :  { %1287 = shalt.err (!%p1284_p8)
}
 0x850   :  { %s1288_s5 = scalar_lea.hbm %s1528_s6, 256 }
 0x851   :  { %p1289_p9 = scmp.ne.s32.totalorder %s1528_s6, %s1288_s5  ;;  %p1292_p10 = scmp.lt.u32.totalorder %s1288_s5, %s1528_s6 }
 0x853   :  { %p1294_p11 = pnand %p1292_p10, %p1289_p9 }
 0x855   :  { %1297 = shalt.err (!%p1294_p11)
}
 0x856   :  { %915 = dma.vmem_to_hbm [thread:$0]  %s910_s25, 256, %s1528_s6, [#allocation4], %s1308_s9, %s1308_s9, %s1309_s10  }
 0x857   :  { %1304 = dma.done.wait [#allocation4], 256  }
 0x858   :  { %1305 = vsyncadd [#allocation4], 4294967040 }
 0x859   :  { %919 = vsyncpa [#allocation3], 1 }
 0x85a   :  { %920 = vsyncpa [#allocation6], 1 }
 0x85b   :  { %921 = vsyncpa [#allocation9], 1 }
 0x85c   :  { %922 = vsyncpa [#allocation4], 1 }

</bundles_post_ra>
